<compile_context>
chip_gen: v6e
topology: v6e:2x2x1
jax: 0.10.0
libtpu: 0.0.40
codegen_flags: <defaults>
</compile_context>

<pallas_src>
import functools
import math

import jax
import jax.numpy as jnp
from jax.experimental import pallas as pl
from jax.experimental.pallas import tpu as pltpu


def _round_up(x, n):
    return ((x + n - 1) // n) * n


def _sublane(dtype):
    return {4: 8, 2: 16, 1: 32}.get(jnp.dtype(dtype).itemsize, 8)


def _choose_fold(in_features, k1, nmodes):
    """Largest power-of-2 fold s.t. padded K <= 256 and padded OUT <= 1024."""
    def ok(f):
        if f > 128:
            return False
        g = 128 // f                       # per-copy column-padding granule
        f_pad = _round_up(max(in_features, 1), g)
        k1_pad = _round_up(k1, g)
        nm_pad = _round_up(nmodes, g)
        return f * f_pad <= 256 and f * (k1_pad + nm_pad) <= 1024

    fold = 1
    while ok(fold * 2):
        fold *= 2
    return fold


def _t2v_kernel(tau_ref, w_ref, b_ref, o_ref, *, c1):
    # tau_ref: [TM, fold*F_pad]  w_ref: [fold*F_pad, out_tot]  b_ref: [1, out_tot]
    y = jnp.dot(tau_ref[...], w_ref[...], preferred_element_type=jnp.float32)
    y = y + b_ref[...].astype(jnp.float32)
    # cos columns are the first c1 lanes; c1 is a multiple of 128, so both
    # slices below are lane-aligned (no masked partial ops).
    if c1 > 0:
        o_ref[:, :c1] = jnp.cos(y[:, :c1]).astype(o_ref.dtype)
    if c1 < o_ref.shape[1]:
        o_ref[:, c1:] = y[:, c1:].astype(o_ref.dtype)


def make_cosine_activation(w, b, w0, b0, *, tm=2048):
    """Precompute folded weights once; return a jitted apply(tau) closure."""
    in_features, k1 = w.shape
    nmodes = w0.shape[1]
    out_features = k1 + nmodes
    wdtype = w.dtype

    fold = _choose_fold(in_features, k1, nmodes)
    g = 128 // fold
    f_pad = _round_up(max(in_features, 1), g)
    k1_pad = _round_up(k1, g)
    nm_pad = _round_up(nmodes, g)
    k_tot = fold * f_pad                 # multiple of 128
    c1 = fold * k1_pad                   # multiple of 128 (cos block width)
    out_tot = fold * (k1_pad + nm_pad)   # multiple of 128

    # --- hoisted weight preprocessing (runs once) ---
    eye = jnp.eye(fold, dtype=wdtype)
    w_cos = jnp.pad(w, ((0, f_pad - in_features), (0, k1_pad - k1)))
    w_lin = jnp.pad(w0, ((0, f_pad - in_features), (0, nm_pad - nmodes)))
    w_big = jnp.concatenate([jnp.kron(eye, w_cos), jnp.kron(eye, w_lin)], axis=1)
    b_big = jnp.concatenate([
        jnp.tile(jnp.pad(b, (0, k1_pad - k1)), fold),
        jnp.tile(jnp.pad(b0, (0, nm_pad - nmodes)), fold),
    ]).reshape(1, out_tot).astype(wdtype)
    # TODO(synk): on v5e, optionally cast tau/w_big to bf16 here (halves HBM
    # traffic, restores MXU headroom) at the cost of ~1e-2 tolerance.

    def apply(tau):
        assert tau.shape[-1] == in_features
        lead = tau.shape[:-1]
        m = math.prod(lead) if lead else 1
        if m == 0:
            return jnp.zeros(lead + (out_features,), tau.dtype)

        itemsize = jnp.dtype(tau.dtype).itemsize
        sub = _sublane(tau.dtype)

        m_folded = -(-m // fold)
        # Row-tile sizing: cap single-buffer footprint (~16 MiB => ~32 MiB
        # double-buffered), then balance the grid so padding waste is tiny and
        # there are >= 2 steps when there is enough work (v7x megacore).
        bytes_per_row = (k_tot + out_tot) * itemsize
        max_tm = max(sub, ((16 << 20) // bytes_per_row) // sub * sub)
        tm_cap = max(sub, min(tm, max_tm))
        steps = max(1, -(-m_folded // tm_cap))
        if steps == 1 and m_folded > sub:
            steps = 2
        tm_eff = _round_up(-(-m_folded // steps), sub)
        m_folded_pad = steps * tm_eff
        m_pad = m_folded_pad * fold

        tau2d = tau.reshape(m, in_features)
        tau2d = jnp.pad(tau2d, ((0, m_pad - m), (0, f_pad - in_features)))
        tau_folded = tau2d.reshape(m_folded_pad, k_tot)

        # Double-buffered in/out tiles + VMEM-resident weights + slack,
        # capped with headroom vs v7x's 64 MiB per-TC VMEM.
        vmem_need = (2 * tm_eff * (k_tot + out_tot)
                     + 2 * (k_tot + 1) * out_tot) * itemsize
        vmem_limit = int(min(max(vmem_need + (4 << 20), 16 << 20), 48 << 20))

        out_folded = pl.pallas_call(
            functools.partial(_t2v_kernel, c1=c1),
            out_shape=jax.ShapeDtypeStruct((m_folded_pad, out_tot), tau.dtype),
            grid_spec=pltpu.PrefetchScalarGridSpec(
                num_scalar_prefetch=0,
                grid=(steps,),
                in_specs=[
                    pl.BlockSpec((tm_eff, k_tot), lambda i: (i, 0)),
                    pl.BlockSpec((k_tot, out_tot), lambda i: (0, 0)),  # resident
                    pl.BlockSpec((1, out_tot), lambda i: (0, 0)),      # resident
                ],
                out_specs=pl.BlockSpec((tm_eff, out_tot), lambda i: (i, 0)),
            ),
            compiler_params=pltpu.CompilerParams(
                dimension_semantics=("parallel",),   # split over v7x's 2 TCs
                vmem_limit_bytes=vmem_limit,
            ),
        )(tau_folded, w_big, b_big)

        # Undo lane folding / column padding (layout plumbing, fuses under jit).
        cos_part = out_folded[:, :c1].reshape(m_folded_pad, fold, k1_pad)[:, :, :k1]
        lin_part = out_folded[:, c1:].reshape(m_folded_pad, fold, nm_pad)[:, :, :nmodes]
        out2d = jnp.concatenate([cos_part, lin_part], axis=-1)
        out2d = out2d.reshape(m_pad, out_features)[:m]
        return out2d.reshape(lead + (out_features,))

    return jax.jit(apply)


def cosine_activation(tau, w, b, w0, b0, *, tm=2048):
    """One-shot convenience wrapper (prefer make_cosine_activation for reuse)."""
    return make_cosine_activation(w, b, w0, b0, tm=tm)(tau)


def init_params(key, in_features, nmodes, out_features, dtype=jnp.float32):
    """Deterministic parameter init matching the PyTorch module's shapes."""
    k0, k1, k2, k3 = jax.random.split(key, 4)
    k1_cols = out_features - nmodes

    def xavier(k, fan_in, fan_out):
        bound = (6.0 / (fan_in + fan_out)) ** 0.5
        return jax.random.uniform(k, (fan_in, fan_out), dtype,
                                  minval=-bound, maxval=bound)

    w0 = xavier(k0, in_features, nmodes)
    b0 = jax.random.normal(k1, (nmodes,), dtype)
    w = xavier(k2, in_features, k1_cols)
    b = jax.random.normal(k3, (k1_cols,), dtype)
    return w, b, w0, b0


def reference(tau, w, b, w0, b0):
    v1 = jnp.cos(jnp.matmul(tau, w) + b)
    v2 = jnp.matmul(tau, w0) + b0
    return jnp.concatenate([v1, v2], axis=-1)


if __name__ == "__main__":
    in_features, nmodes, out_features = 16, 8, 32
    batch, seq = 2, 8

    key = jax.random.PRNGKey(0)
    kp, kx = jax.random.split(key)
    w, b, w0, b0 = init_params(kp, in_features, nmodes, out_features)
    tau = jax.random.normal(kx, (batch, seq, in_features), jnp.float32)

    apply_fn = make_cosine_activation(w, b, w0, b0)
    out = jax.block_until_ready(apply_fn(tau))

    ref = reference(tau, w, b, w0, b0)
    assert out.shape == (batch, seq, out_features), out.shape
    assert jnp.allclose(out, ref, atol=1e-5, rtol=1e-5), \
        float(jnp.max(jnp.abs(out - ref)))

    print("KERNEL_OK")
</pallas_src>

<mosaic_0001>
module attributes {stable_mosaic.version = 11 : i64} {
  func.func @_t2v_kernel(%arg0: i32, %arg1: memref<8x256xf32, #tpu.memory_space<vmem>>, %arg2: memref<256x512xf32, #tpu.memory_space<vmem>>, %arg3: memref<1x512xf32, #tpu.memory_space<vmem>>, %arg4: memref<8x512xf32, #tpu.memory_space<vmem>>) attributes {dimension_semantics = [#tpu.dimension_semantics<parallel>], iteration_bounds = array<i64: 1>, scalar_prefetch = 0 : i64, scratch_operands = 0 : i64, tpu.core_type = #tpu.core_type<tc>, window_params = [{transform_indices = @transform_0, window_bounds = array<i64: 8, 256>}, {pipeline_mode = #tpu.pipeline_mode<synchronous>, transform_indices = @transform_1, window_bounds = array<i64: 256, 512>}, {pipeline_mode = #tpu.pipeline_mode<synchronous>, transform_indices = @transform_2, window_bounds = array<i64: 1, 512>}, {transform_indices = @transform_3, window_bounds = array<i64: 8, 512>}]} {
    %c0 = arith.constant 0 : index
    %c0_0 = arith.constant 0 : index
    %0 = vector.load %arg1[%c0, %c0_0] : memref<8x256xf32, #tpu.memory_space<vmem>>, vector<8x256xf32>
    %c0_1 = arith.constant 0 : index
    %c0_2 = arith.constant 0 : index
    %1 = vector.load %arg2[%c0_1, %c0_2] : memref<256x512xf32, #tpu.memory_space<vmem>>, vector<256x512xf32>
    %cst = arith.constant dense<0.000000e+00> : vector<8x512xf32>
    %2 = tpu.matmul %0, %1, %cst {dimension_numbers = #tpu.dot_dimension_numbers<[1], [0], [0], [1], [0, 0, 1, 1], [], []>} : vector<8x256xf32>, vector<256x512xf32>, vector<8x512xf32> -> vector<8x512xf32>
    %c0_3 = arith.constant 0 : index
    %c0_4 = arith.constant 0 : index
    %3 = vector.load %arg3[%c0_3, %c0_4] : memref<1x512xf32, #tpu.memory_space<vmem>>, vector<1x512xf32>
    %4 = vector.broadcast %3 : vector<1x512xf32> to vector<8x512xf32>
    %5 = arith.addf %2, %4 : vector<8x512xf32>
    %6 = vector.extract_strided_slice %5 {offsets = [0, 0], sizes = [8, 384], strides = [1, 1]} : vector<8x512xf32> to vector<8x384xf32>
    %7 = math.cos %6 : vector<8x384xf32>
    %c0_5 = arith.constant 0 : index
    %c0_6 = arith.constant 0 : index
    %8 = vector.load %arg4[%c0_5, %c0_6] : memref<8x512xf32, #tpu.memory_space<vmem>>, vector<8x384xf32>
    tpu.vector_store %arg4[%c0_5, %c0_6], %7 {strides = array<i32>} : memref<8x512xf32, #tpu.memory_space<vmem>>, vector<8x384xf32>,
    %9 = vector.extract_strided_slice %5 {offsets = [0, 384], sizes = [8, 128], strides = [1, 1]} : vector<8x512xf32> to vector<8x128xf32>
    %c0_7 = arith.constant 0 : index
    %c384 = arith.constant 384 : index
    %10 = vector.load %arg4[%c0_7, %c384] : memref<8x512xf32, #tpu.memory_space<vmem>>, vector<8x128xf32>
    tpu.vector_store %arg4[%c0_7, %c384], %9 {strides = array<i32>} : memref<8x512xf32, #tpu.memory_space<vmem>>, vector<8x128xf32>,
    return
  }
  func.func @transform_0(%arg0: i32) -> (i32, i32) {
    %c0_i32 = arith.constant 0 : i32
    %c0_i32_0 = arith.constant 0 : i32
    return %arg0, %c0_i32 : i32, i32
  }
  func.func @transform_1(%arg0: i32) -> (i32, i32) {
    %c0_i32 = arith.constant 0 : i32
    %c0_i32_0 = arith.constant 0 : i32
    %c0_i32_1 = arith.constant 0 : i32
    return %c0_i32, %c0_i32_0 : i32, i32
  }
  func.func @transform_2(%arg0: i32) -> (i32, i32) {
    %c0_i32 = arith.constant 0 : i32
    %c0_i32_0 = arith.constant 0 : i32
    %c0_i32_1 = arith.constant 0 : i32
    return %c0_i32, %c0_i32_0 : i32, i32
  }
  func.func @transform_3(%arg0: i32) -> (i32, i32) {
    %c0_i32 = arith.constant 0 : i32
    %c0_i32_0 = arith.constant 0 : i32
    return %arg0, %c0_i32 : i32, i32
  }
}

</mosaic_0001>

<bundles_post_ra>
// kernel: apply.1
= control target key start
LH: loop header
LB: loop body
LE: loop exit
PB: predicated region body
PF: predicated region fallthrough
CT: control target
= control target key end

     0   :  { %8 = vsyncpa [#allocation3], 0  ;;  %s707_s12 = smov [#allocation2]   ;;  %s948_s0 = inlined_call_operand.vmem [shape: f32[8,256], index: 0, kind: input, shape index: {}]   ;;  %s949_s1 = inlined_call_operand.hbm [shape: f32[256,512], index: 1, kind: input, shape index: {}]   ;;  %s950_s2 = inlined_call_operand.vmem [shape: f32[1,512], index: 2, kind: input, shape index: {}]   ;;  %s951_s3 = inlined_call_operand.vmem [shape: f32[8,512], index: 3, kind: output, shape index: {}]  }
   0x1   :  { %s16_s13 = sshll.u32 %s707_s12, 4  ;;  %s17_s13 = int_to_ptr.vmem [resolvable:$true] %s16_s13 }
   0x2   :  { %s693_s14 = scalar_lea.vmem %s17_s13, 16384  ;;  %p698_p1 = scmp.lt.s32.totalorder %s17_s13, %s17_s13 }
   0x3   :  { %p694_p0 = scmp.ne.s32.totalorder %s17_s13, %s693_s14  ;;  %p699_p2 = scmp.lt.s32.totalorder %s693_s14, %s693_s14 }
   0x5   :  { %p700_p3 = por %p699_p2, %p698_p1 }
   0x7   :  { %p701_p4 = pnand %p700_p3, %p694_p0 }
   0x9   :  { %704 = shalt.err (!%p701_p4)
}
   0xa   :  { %s708_s15 = smov 512   ;;  %s709_s16 = smov 32  }
   0xb   :  { %22 = dma.hbm_to_vmem [thread:$0]  %s949_s1, 16384, %s17_s13, [#allocation3], %s708_s15, %s708_s15, %s709_s16  }
   0xc   :  { %705 = dma.done.wait [#allocation3], 16384  }
   0xd   :  { %706 = vsyncadd [#allocation3], 4294950912  ;;  %v91_v0 = vld [vmem:[#allocation2 + $0x1e8] sm:$0xff]  ;;  %v93_v1 = vld [vmem:[#allocation2 + $0x1f8] sm:$0xff] }
   0xe   :  { %v90_v2 = vld [vmem:[#allocation2 + $0x1e0] sm:$0xff]  ;;  %180 = vmatprep.subr.mxu0 %v91_v0  ;;  %251 = vmatprep.subr.mxu1 %v93_v1  ;;  %v92_v3 = vld [vmem:[#allocation2 + $0x1f0] sm:$0xff]  ;;  %v87_v4 = vld [vmem:[#allocation2 + $0x1c8] sm:$0xff] }
   0xf   :  { %v89_v5 = vld [vmem:[#allocation2 + $0x1d8] sm:$0xff]  ;;  %181 = vmatpush1.msra.mxu0 %v90_v2  ;;  %252 = vmatpush1.msra.mxu1 %v92_v3  ;;  %v86_v6 = vld [vmem:[#allocation2 + $0x1c0] sm:$0xff]  ;;  %v88_v7 = vld [vmem:[#allocation2 + $0x1d0] sm:$0xff] }
  0x10   :  { %v83_v8 = vld [vmem:[#allocation2 + $0x1a8] sm:$0xff]  ;;  %182 = vmatprep.subr.mxu0 %v87_v4  ;;  %253 = vmatprep.subr.mxu1 %v89_v5  ;;  %v85_v9 = vld [vmem:[#allocation2 + $0x1b8] sm:$0xff]  ;;  %v82_v10 = vld [vmem:[#allocation2 + $0x1a0] sm:$0xff] }
  0x11   :  { %v84_v11 = vld [vmem:[#allocation2 + $0x1b0] sm:$0xff]  ;;  %183 = vmatpush1.msra.mxu0 %v86_v6  ;;  %254 = vmatpush1.msra.mxu1 %v88_v7  ;;  %v79_v12 = vld [vmem:[#allocation2 + $0x188] sm:$0xff]  ;;  %v81_v13 = vld [vmem:[#allocation2 + $0x198] sm:$0xff] }
  0x12   :  { %184 = vmatprep.subr.mxu0 %v83_v8  ;;  %255 = vmatprep.subr.mxu1 %v85_v9  ;;  %v78_v14 = vld [vmem:[#allocation2 + $0x180] sm:$0xff]  ;;  %v80_v15 = vld [vmem:[#allocation2 + $0x190] sm:$0xff]  ;;  %v75_v16 = vld [vmem:[#allocation2 + $0x168] sm:$0xff] }
  0x13   :  { %185 = vmatpush1.msra.mxu0 %v82_v10  ;;  %256 = vmatpush1.msra.mxu1 %v84_v11  ;;  %v77_v17 = vld [vmem:[#allocation2 + $0x178] sm:$0xff]  ;;  %v74_v18 = vld [vmem:[#allocation2 + $0x160] sm:$0xff]  ;;  %v76_v19 = vld [vmem:[#allocation2 + $0x170] sm:$0xff] }
  0x14   :  { %186 = vmatprep.subr.mxu0 %v79_v12  ;;  %257 = vmatprep.subr.mxu1 %v81_v13  ;;  %v71_v20 = vld [vmem:[#allocation2 + $0x148] sm:$0xff]  ;;  %v73_v21 = vld [vmem:[#allocation2 + $0x158] sm:$0xff]  ;;  %v70_v22 = vld [vmem:[#allocation2 + $0x140] sm:$0xff] }
  0x15   :  { %187 = vmatpush1.msra.mxu0 %v78_v14  ;;  %258 = vmatpush1.msra.mxu1 %v80_v15  ;;  %v72_v23 = vld [vmem:[#allocation2 + $0x150] sm:$0xff]  ;;  %v67_v24 = vld [vmem:[#allocation2 + $0x128] sm:$0xff]  ;;  %v69_v25 = vld [vmem:[#allocation2 + $0x138] sm:$0xff] }
  0x16   :  { %188 = vmatprep.subr.mxu0 %v75_v16  ;;  %259 = vmatprep.subr.mxu1 %v77_v17  ;;  %v66_v26 = vld [vmem:[#allocation2 + $0x120] sm:$0xff]  ;;  %v68_v27 = vld [vmem:[#allocation2 + $0x130] sm:$0xff]  ;;  %v63_v28 = vld [vmem:[#allocation2 + $0x108] sm:$0xff] }
  0x17   :  { %189 = vmatpush1.msra.mxu0 %v74_v18  ;;  %260 = vmatpush1.msra.mxu1 %v76_v19  ;;  %v65_v29 = vld [vmem:[#allocation2 + $0x118] sm:$0xff]  ;;  %v62_v30 = vld [vmem:[#allocation2 + $0x100] sm:$0xff]  ;;  %v64_v31 = vld [vmem:[#allocation2 + $0x110] sm:$0xff] }
  0x18   :  { %190 = vmatprep.subr.mxu0 %v71_v20  ;;  %261 = vmatprep.subr.mxu1 %v73_v21  ;;  %v59_v32 = vld [vmem:[#allocation2 + $0xe8] sm:$0xff]  ;;  %v61_v33 = vld [vmem:[#allocation2 + $0xf8] sm:$0xff]  ;;  %v58_v34 = vld [vmem:[#allocation2 + $0xe0] sm:$0xff] }
  0x19   :  { %191 = vmatpush1.msra.mxu0 %v70_v22  ;;  %262 = vmatpush1.msra.mxu1 %v72_v23  ;;  %v60_v35 = vld [vmem:[#allocation2 + $0xf0] sm:$0xff]  ;;  %v55_v36 = vld [vmem:[#allocation2 + $0xc8] sm:$0xff]  ;;  %v57_v37 = vld [vmem:[#allocation2 + $0xd8] sm:$0xff] }
  0x1a   :  { %192 = vmatprep.subr.mxu0 %v67_v24  ;;  %263 = vmatprep.subr.mxu1 %v69_v25  ;;  %v54_v38 = vld [vmem:[#allocation2 + $0xc0] sm:$0xff]  ;;  %v56_v39 = vld [vmem:[#allocation2 + $0xd0] sm:$0xff]  ;;  %v51_v40 = vld [vmem:[#allocation2 + $0xa8] sm:$0xff] }
  0x1b   :  { %193 = vmatpush1.msra.mxu0 %v66_v26  ;;  %264 = vmatpush1.msra.mxu1 %v68_v27  ;;  %v53_v41 = vld [vmem:[#allocation2 + $0xb8] sm:$0xff]  ;;  %v50_v42 = vld [vmem:[#allocation2 + $0xa0] sm:$0xff]  ;;  %v52_v43 = vld [vmem:[#allocation2 + $0xb0] sm:$0xff] }
  0x1c   :  { %194 = vmatprep.subr.mxu0 %v63_v28  ;;  %265 = vmatprep.subr.mxu1 %v65_v29  ;;  %v47_v44 = vld [vmem:[#allocation2 + $0x88] sm:$0xff]  ;;  %v49_v45 = vld [vmem:[#allocation2 + $0x98] sm:$0xff]  ;;  %v46_v46 = vld [vmem:[#allocation2 + $0x80] sm:$0xff] }
  0x1d   :  { %195 = vmatpush1.msra.mxu0 %v62_v30  ;;  %266 = vmatpush1.msra.mxu1 %v64_v31  ;;  %v48_v47 = vld [vmem:[#allocation2 + $0x90] sm:$0xff]  ;;  %v43_v48 = vld [vmem:[#allocation2 + $0x68] sm:$0xff]  ;;  %v45_v49 = vld [vmem:[#allocation2 + $0x78] sm:$0xff] }
  0x1e   :  { %196 = vmatprep.subr.mxu0 %v59_v32  ;;  %267 = vmatprep.subr.mxu1 %v61_v33  ;;  %v42_v50 = vld [vmem:[#allocation2 + $0x60] sm:$0xff]  ;;  %v44_v51 = vld [vmem:[#allocation2 + $0x70] sm:$0xff]  ;;  %v39_v52 = vld [vmem:[#allocation2 + $0x48] sm:$0xff] }
  0x1f   :  { %197 = vmatpush1.msra.mxu0 %v58_v34  ;;  %268 = vmatpush1.msra.mxu1 %v60_v35  ;;  %v41_v53 = vld [vmem:[#allocation2 + $0x58] sm:$0xff]  ;;  %v38_v54 = vld [vmem:[#allocation2 + $0x40] sm:$0xff]  ;;  %v40_v55 = vld [vmem:[#allocation2 + $0x50] sm:$0xff] }
  0x20   :  { %198 = vmatprep.subr.mxu0 %v55_v36  ;;  %269 = vmatprep.subr.mxu1 %v57_v37  ;;  %v35_v56 = vld [vmem:[#allocation2 + $0x28] sm:$0xff]  ;;  %v37_v57 = vld [vmem:[#allocation2 + $0x38] sm:$0xff]  ;;  %v34_v58 = vld [vmem:[#allocation2 + $0x20] sm:$0xff] }
  0x21   :  { %199 = vmatpush1.msra.mxu0 %v54_v38  ;;  %270 = vmatpush1.msra.mxu1 %v56_v39  ;;  %v36_v59 = vld [vmem:[#allocation2 + $0x30] sm:$0xff]  ;;  %v31_v60 = vld [vmem:[#allocation2 + $0x8] sm:$0xff]  ;;  %v33_v61 = vld [vmem:[#allocation2 + $0x18] sm:$0xff] }
  0x22   :  { %200 = vmatprep.subr.mxu0 %v51_v40  ;;  %271 = vmatprep.subr.mxu1 %v53_v41  ;;  %v30_v62 = vld [vmem:[#allocation2] sm:$0xff]  ;;  %v32_v63 = vld [vmem:[#allocation2 + $0x10] sm:$0xff]  ;;  %v155_v0 = vld [vmem:[#allocation2 + $0x3e8] sm:$0xff] }
  0x23   :  { %201 = vmatpush1.msra.mxu0 %v50_v42  ;;  %272 = vmatpush1.msra.mxu1 %v52_v43  ;;  %v157_v1 = vld [vmem:[#allocation2 + $0x3f8] sm:$0xff]  ;;  %v154_v2 = vld [vmem:[#allocation2 + $0x3e0] sm:$0xff]  ;;  %v156_v3 = vld [vmem:[#allocation2 + $0x3f0] sm:$0xff] }
  0x24   :  { %202 = vmatprep.subr.mxu0 %v47_v44  ;;  %273 = vmatprep.subr.mxu1 %v49_v45  ;;  %v151_v4 = vld [vmem:[#allocation2 + $0x3c8] sm:$0xff]  ;;  %v153_v5 = vld [vmem:[#allocation2 + $0x3d8] sm:$0xff]  ;;  %v150_v6 = vld [vmem:[#allocation2 + $0x3c0] sm:$0xff] }
  0x25   :  { %203 = vmatpush1.msra.mxu0 %v46_v46  ;;  %274 = vmatpush1.msra.mxu1 %v48_v47  ;;  %v152_v7 = vld [vmem:[#allocation2 + $0x3d0] sm:$0xff]  ;;  %v147_v8 = vld [vmem:[#allocation2 + $0x3a8] sm:$0xff]  ;;  %v149_v9 = vld [vmem:[#allocation2 + $0x3b8] sm:$0xff] }
  0x26   :  { %204 = vmatprep.subr.mxu0 %v43_v48  ;;  %275 = vmatprep.subr.mxu1 %v45_v49  ;;  %v146_v10 = vld [vmem:[#allocation2 + $0x3a0] sm:$0xff]  ;;  %v148_v11 = vld [vmem:[#allocation2 + $0x3b0] sm:$0xff]  ;;  %v143_v12 = vld [vmem:[#allocation2 + $0x388] sm:$0xff] }
  0x27   :  { %205 = vmatpush1.msra.mxu0 %v42_v50  ;;  %276 = vmatpush1.msra.mxu1 %v44_v51  ;;  %v145_v13 = vld [vmem:[#allocation2 + $0x398] sm:$0xff]  ;;  %v142_v14 = vld [vmem:[#allocation2 + $0x380] sm:$0xff]  ;;  %v144_v15 = vld [vmem:[#allocation2 + $0x390] sm:$0xff] }
  0x28   :  { %206 = vmatprep.subr.mxu0 %v39_v52  ;;  %277 = vmatprep.subr.mxu1 %v41_v53  ;;  %v139_v16 = vld [vmem:[#allocation2 + $0x368] sm:$0xff]  ;;  %v141_v17 = vld [vmem:[#allocation2 + $0x378] sm:$0xff]  ;;  %v138_v18 = vld [vmem:[#allocation2 + $0x360] sm:$0xff] }
  0x29   :  { %207 = vmatpush1.msra.mxu0 %v38_v54  ;;  %278 = vmatpush1.msra.mxu1 %v40_v55  ;;  %v140_v19 = vld [vmem:[#allocation2 + $0x370] sm:$0xff]  ;;  %v135_v20 = vld [vmem:[#allocation2 + $0x348] sm:$0xff]  ;;  %v137_v21 = vld [vmem:[#allocation2 + $0x358] sm:$0xff] }
  0x2a   :  { %208 = vmatprep.subr.mxu0 %v35_v56  ;;  %279 = vmatprep.subr.mxu1 %v37_v57  ;;  %v134_v22 = vld [vmem:[#allocation2 + $0x340] sm:$0xff]  ;;  %v136_v23 = vld [vmem:[#allocation2 + $0x350] sm:$0xff]  ;;  %v131_v24 = vld [vmem:[#allocation2 + $0x328] sm:$0xff] }
  0x2b   :  { %209 = vmatpush1.msra.mxu0 %v34_v58  ;;  %280 = vmatpush1.msra.mxu1 %v36_v59  ;;  %v133_v25 = vld [vmem:[#allocation2 + $0x338] sm:$0xff]  ;;  %v130_v26 = vld [vmem:[#allocation2 + $0x320] sm:$0xff]  ;;  %v132_v27 = vld [vmem:[#allocation2 + $0x330] sm:$0xff] }
  0x2c   :  { %210 = vmatprep.subr.mxu0 %v31_v60  ;;  %281 = vmatprep.subr.mxu1 %v33_v61  ;;  %v127_v28 = vld [vmem:[#allocation2 + $0x308] sm:$0xff]  ;;  %v129_v29 = vld [vmem:[#allocation2 + $0x318] sm:$0xff]  ;;  %v126_v30 = vld [vmem:[#allocation2 + $0x300] sm:$0xff] }
  0x2d   :  { %211 = vmatpush1.msra.mxu0 %v30_v62  ;;  %282 = vmatpush1.msra.mxu1 %v32_v63  ;;  %v128_v31 = vld [vmem:[#allocation2 + $0x310] sm:$0xff]  ;;  %v123_v32 = vld [vmem:[#allocation2 + $0x2e8] sm:$0xff]  ;;  %v125_v33 = vld [vmem:[#allocation2 + $0x2f8] sm:$0xff] }
  0x2e   :  { %212 = vmatprep.subr.mxu0 %v155_v0  ;;  %283 = vmatprep.subr.mxu1 %v157_v1  ;;  %v122_v34 = vld [vmem:[#allocation2 + $0x2e0] sm:$0xff]  ;;  %v124_v35 = vld [vmem:[#allocation2 + $0x2f0] sm:$0xff]  ;;  %v119_v36 = vld [vmem:[#allocation2 + $0x2c8] sm:$0xff] }
  0x2f   :  { %213 = vmatpush2.msra.mxu0 %v154_v2  ;;  %284 = vmatpush2.msra.mxu1 %v156_v3  ;;  %v121_v37 = vld [vmem:[#allocation2 + $0x2d8] sm:$0xff]  ;;  %v118_v38 = vld [vmem:[#allocation2 + $0x2c0] sm:$0xff]  ;;  %v120_v39 = vld [vmem:[#allocation2 + $0x2d0] sm:$0xff]  ;;  %v160_v2 = vlaneseq }
  0x30   :  { %214 = vmatprep.subr.mxu0 %v151_v4  ;;  %285 = vmatprep.subr.mxu1 %v153_v5  ;;  %v115_v40 = vld [vmem:[#allocation2 + $0x2a8] sm:$0xff]  ;;  %v117_v41 = vld [vmem:[#allocation2 + $0x2b8] sm:$0xff]  ;;  %v114_v42 = vld [vmem:[#allocation2 + $0x2a0] sm:$0xff] }
  0x31   :  { %215 = vmatpush2.msra.mxu0 %v150_v6  ;;  %286 = vmatpush2.msra.mxu1 %v152_v7  ;;  %v116_v43 = vld [vmem:[#allocation2 + $0x2b0] sm:$0xff]  ;;  %v111_v44 = vld [vmem:[#allocation2 + $0x288] sm:$0xff]  ;;  %v113_v45 = vld [vmem:[#allocation2 + $0x298] sm:$0xff]  ;;  %v161_v3 = vshrl.u32 %v160_v2, 7 }
  0x32   :  { %216 = vmatprep.subr.mxu0 %v147_v8  ;;  %287 = vmatprep.subr.mxu1 %v149_v9  ;;  %v110_v46 = vld [vmem:[#allocation2 + $0x280] sm:$0xff]  ;;  %v112_v47 = vld [vmem:[#allocation2 + $0x290] sm:$0xff]  ;;  %v107_v48 = vld [vmem:[#allocation2 + $0x268] sm:$0xff] }
  0x33   :  { %217 = vmatpush2.msra.mxu0 %v146_v10  ;;  %288 = vmatpush2.msra.mxu1 %v148_v11  ;;  %v109_v49 = vld [vmem:[#allocation2 + $0x278] sm:$0xff]  ;;  %v106_v50 = vld [vmem:[#allocation2 + $0x260] sm:$0xff]  ;;  %v108_v51 = vld [vmem:[#allocation2 + $0x270] sm:$0xff]  ;;  %v162_v4 = vsub.s32 0, %v161_v3  ;;  %v170_v5 = vsub.s32 2, %v161_v3  ;;  %v166_v9 = vsub.s32 1, %v161_v3 }
  0x34   :  { %218 = vmatprep.subr.mxu0 %v143_v12  ;;  %289 = vmatprep.subr.mxu1 %v145_v13  ;;  %v103_v52 = vld [vmem:[#allocation2 + $0x248] sm:$0xff]  ;;  %v105_v53 = vld [vmem:[#allocation2 + $0x258] sm:$0xff]  ;;  %v102_v54 = vld [vmem:[#allocation2 + $0x240] sm:$0xff]  ;;  %v174_v10 = vsub.s32 3, %v161_v3 }
  0x35   :  { %219 = vmatpush2.msra.mxu0 %v142_v14  ;;  %290 = vmatpush2.msra.mxu1 %v144_v15  ;;  %v104_v55 = vld [vmem:[#allocation2 + $0x250] sm:$0xff]  ;;  %v99_v56 = vld [vmem:[#allocation2 + $0x228] sm:$0xff]  ;;  %v101_v57 = vld [vmem:[#allocation2 + $0x238] sm:$0xff] }
  0x36   :  { %220 = vmatprep.subr.mxu0 %v139_v16  ;;  %291 = vmatprep.subr.mxu1 %v141_v17  ;;  %v98_v58 = vld [vmem:[#allocation2 + $0x220] sm:$0xff]  ;;  %v100_v59 = vld [vmem:[#allocation2 + $0x230] sm:$0xff]  ;;  %v95_v60 = vld [vmem:[#allocation2 + $0x208] sm:$0xff] }
  0x37   :  { %221 = vmatpush2.msra.mxu0 %v138_v18  ;;  %292 = vmatpush2.msra.mxu1 %v140_v19  ;;  %v97_v61 = vld [vmem:[#allocation2 + $0x218] sm:$0xff]  ;;  %v94_v62 = vld [vmem:[#allocation2 + $0x200] sm:$0xff]  ;;  %v29_v63 = vld [vmem:[%s948_s0 + $0x8] sm:$0xff] }
  0x38   :  { %222 = vmatprep.subr.mxu0 %v135_v20  ;;  %293 = vmatprep.subr.mxu1 %v137_v21  ;;  %v96_v0 = vld [vmem:[#allocation2 + $0x210] sm:$0xff]  ;;  %v28_v1 = vld [vmem:[%s948_s0] sm:$0xff] }
  0x39   :  { %223 = vmatpush2.msra.mxu0 %v134_v22  ;;  %294 = vmatpush2.msra.mxu1 %v136_v23  ;;  %v158_v6 = vld [vmem:[%s950_s2] sm:$0xf] }
  0x3a   :  { %224 = vmatprep.subr.mxu0 %v131_v24  ;;  %295 = vmatprep.subr.mxu1 %v133_v25  ;;  %v163_v7 = vrot.slane %v158_v6, %v162_v4  ;;  %v171_v8 = vrot.slane %v158_v6, %v170_v5  ;;  %v167_v15 = vrot.slane %v158_v6, %v166_v9 }
  0x3b   :  { %225 = vmatpush2.msra.mxu0 %v130_v26  ;;  %296 = vmatpush2.msra.mxu1 %v132_v27  ;;  %v175_v17 = vrot.slane %v158_v6, %v174_v10 }
  0x3c   :  { %226 = vmatprep.subr.mxu0 %v127_v28  ;;  %297 = vmatprep.subr.mxu1 %v129_v29 }
  0x3d   :  { %227 = vmatpush2.msra.mxu0 %v126_v30  ;;  %298 = vmatpush2.msra.mxu1 %v128_v31 }
  0x3e   :  { %228 = vmatprep.subr.mxu0 %v123_v32  ;;  %299 = vmatprep.subr.mxu1 %v125_v33 }
  0x3f   :  { %229 = vmatpush2.msra.mxu0 %v122_v34  ;;  %300 = vmatpush2.msra.mxu1 %v124_v35 }
  0x40   :  { %230 = vmatprep.subr.mxu0 %v119_v36  ;;  %301 = vmatprep.subr.mxu1 %v121_v37 }
  0x41   :  { %231 = vmatpush2.msra.mxu0 %v118_v38  ;;  %302 = vmatpush2.msra.mxu1 %v120_v39 }
  0x42   :  { %232 = vmatprep.subr.mxu0 %v115_v40  ;;  %303 = vmatprep.subr.mxu1 %v117_v41 }
  0x43   :  { %233 = vmatpush2.msra.mxu0 %v114_v42  ;;  %304 = vmatpush2.msra.mxu1 %v116_v43 }
  0x44   :  { %234 = vmatprep.subr.mxu0 %v111_v44  ;;  %305 = vmatprep.subr.mxu1 %v113_v45 }
  0x45   :  { %235 = vmatpush2.msra.mxu0 %v110_v46  ;;  %306 = vmatpush2.msra.mxu1 %v112_v47  ;;  %v710_v46 = vmov 683565275  }
  0x46   :  { %236 = vmatprep.subr.mxu0 %v107_v48  ;;  %307 = vmatprep.subr.mxu1 %v109_v49 }
  0x47   :  { %237 = vmatpush2.msra.mxu0 %v106_v50  ;;  %308 = vmatpush2.msra.mxu1 %v108_v51  ;;  %v711_v50 = vmov 2475754826  }
  0x48   :  { %238 = vmatprep.subr.mxu0 %v103_v52  ;;  %309 = vmatprep.subr.mxu1 %v105_v53  ;;  %v712_v52 = vmov 2131351028  }
  0x49   :  { %239 = vmatpush2.msra.mxu0 %v102_v54  ;;  %310 = vmatpush2.msra.mxu1 %v104_v55  ;;  %v713_v54 = vmov 2102212464  }
  0x4a   :  { %240 = vmatprep.subr.mxu0 %v99_v56  ;;  %311 = vmatprep.subr.mxu1 %v101_v57  ;;  %v714_v56 = vmov 920167782  }
  0x4b   :  { %241 = vmatpush2.msra.mxu0 %v98_v58  ;;  %312 = vmatpush2.msra.mxu1 %v100_v59 }
  0x4c   :  { %242 = vmatprep.subr.mxu0 %v95_v60  ;;  %313 = vmatprep.subr.mxu1 %v97_v61 }
  0x4d   :  { %243 = vmatpush2.msra.mxu0 %v94_v62  ;;  %244 = vmatprep.mubr.f32.mxu0 %v29_v63 }
  0x4e   :  { %314 = vmatpush2.msra.mxu1 %v96_v0  ;;  %315 = vmatprep.mubr.f32.mxu1 %v29_v63  ;;  %v715_v63 = vmov 1326507024  }
  0x4f   :  { %245 = vmatmul.mubr.f32.vlgmr.msra.gmra.mxu0 %v28_v1  ;;  %316 = vmatmul.mubr.f32.vlgmr.msra.gmra.mxu1 %v28_v1 }
 0x10f   :  { %v246_v11 = vpop.f32.mrf.mxu0  ;;  %v317_v12 = vpop.f32.mrf.mxu1 }
 0x110   :  { %v748_v13 = vadd.f32 %v246_v11, %v163_v7  ;;  %v750_v14 = vadd.f32 %v317_v12, %v171_v8 }
 0x111   :  { %v248_v16 = vpop.f32.mrf.mxu0  ;;  %v319_v20 = vpop.f32.mrf.mxu1 }
 0x112   :  { %v322_v18 = vand.u32 2147483647, %v748_v13  ;;  %v325_v19 = vand.u32 2139095040, %v748_v13  ;;  %v528_v21 = vand.u32 2147483647, %v750_v14  ;;  %v531_v22 = vand.u32 2139095040, %v750_v14 }
 0x113   :  { %v756_v24 = vadd.f32 %v248_v16, %v167_v15  ;;  %v320_v28 = vadd.f32 %v319_v20, %v175_v17 }
 0x114   :  { %v326_v23 = vshrl.u32 %v325_v19, 23  ;;  %v329_v25 = vand.u32 8388607, %v322_v18  ;;  %v532_v26 = vshrl.u32 %v531_v22, 23  ;;  %v535_v27 = vand.u32 8388607, %v528_v21 }
 0x115   :  { %v428_v31 = vand.u32 2139095040, %v756_v24  ;;  %634 = vst [vmem:[%s951_s3 + $0x18] sm:$0xff] %v320_v28 }
 0x116   :  { %v640_v29 = vadd.s32 4294967169, %v326_v23  ;;  %v648_v30 = vadd.s32 4294967169, %v532_v26  ;;  %v330_v33 = vor.u32 8388608, %v329_v25  ;;  %v536_v34 = vor.u32 8388608, %v535_v27 }
 0x117   :  { %v429_v36 = vshrl.u32 %v428_v31, 23 }
 0x118   :  { %v332_v32 = vadd.s32 1, %v640_v29  ;;  %v538_v35 = vadd.s32 1, %v648_v30  ;;  %v766_v42 = vshll.u32 %v330_v33, 8  ;;  %v770_v44 = vshll.u32 %v536_v34, 8 }
 0x119   :  { %v644_v38 = vadd.s32 4294967169, %v429_v36 }
 0x11a   :  { %vm333_vm0 = vcmp.gt.s32.totalorder %v332_v32, 0  ;;  %vm539_vm1 = vcmp.gt.s32.totalorder %v538_v35, 0 }
 0x11b   :  { %v334_v37 = vsel %vm333_vm0, %v332_v32, 0  ;;  %v540_v41 = vsel %vm539_vm1, %v538_v35, 0  ;;  %v773_v49 = vadd.s32 1, %v644_v38 }
 0x11c   :  { %v335_v39 = vshrl.u32 %v334_v37, 5  ;;  %v336_v40 = vand.u32 31, %v334_v37  ;;  %v768_v43 = vshrl.u32 %v540_v41, 5  ;;  %v542_v48 = vand.u32 31, %v540_v41 }
 0x11d   :  { %vm436_vm11 = vcmp.gt.s32.totalorder %v773_v49, 0 }
 0x11e   :  { %v337_v45 = vsub.s32 32, %v336_v40  ;;  %v339_v47 = vshll.u32 %v710_v46, %v336_v40  ;;  %v342_v51 = vshll.u32 %v711_v50, %v336_v40  ;;  %v345_v53 = vshll.u32 %v712_v52, %v336_v40 }
 0x11f   :  { %v348_v55 = vshll.u32 %v713_v54, %v336_v40  ;;  %v351_v57 = vshll.u32 %v714_v56, %v336_v40  ;;  %vm354_vm2 = vcmp.lt.s32.totalorder %v335_v39, 1  ;;  %vm356_vm3 = vcmp.lt.s32.totalorder %v335_v39, 3 }
 0x120   :  { %v340_v58 = vshrl.u32 %v711_v50, %v337_v45  ;;  %v343_v59 = vshrl.u32 %v712_v52, %v337_v45  ;;  %v346_v60 = vshrl.u32 %v713_v54, %v337_v45  ;;  %v338_v61 = vshrl.u32 %v710_v46, %v337_v45 }
 0x121   :  { %v349_v62 = vshrl.u32 %v714_v56, %v337_v45  ;;  %v352_v0 = vshrl.u32 %v715_v63, %v337_v45  ;;  %v543_v4 = vsub.s32 32, %v542_v48  ;;  %vm357_vm4 = vcmp.lt.s32.totalorder %v335_v39, 4 }
 0x122   :  { %v341_v1 = vor.u32 %v340_v58, %v339_v47  ;;  %v344_v2 = vor.u32 %v343_v59, %v342_v51  ;;  %v347_v3 = vor.u32 %v346_v60, %v345_v53  ;;  %v545_v7 = vshll.u32 %v710_v46, %v542_v48 }
 0x123   :  { %v350_v5 = vor.u32 %v349_v62, %v348_v55  ;;  %v353_v6 = vor.u32 %v352_v0, %v351_v57  ;;  %v548_v17 = vshll.u32 %v711_v50, %v542_v48  ;;  %vm355_vm5 = vcmp.lt.s32.totalorder %v335_v39, 2 }
 0x124   :  { %v358_v8 = vsel %vm354_vm2, %v338_v61, %v341_v1  ;;  %v359_v9 = vsel %vm357_vm4, %v347_v3, 2102212464  ;;  %v362_v10 = vsel %vm354_vm2, %v341_v1, %v344_v2  ;;  %v366_v11 = vsel %vm354_vm2, %v344_v2, %v347_v3 }
 0x125   :  { %v360_v12 = vsel %vm356_vm3, %v344_v2, %v359_v9  ;;  %v363_v15 = vsel %vm357_vm4, %v350_v5, 920167782  ;;  %v367_v16 = vsel %vm357_vm4, %v353_v6, 1326507024  ;;  %v546_v22 = vshrl.u32 %v711_v50, %v543_v4 }
 0x126   :  { %v364_v19 = vsel %vm356_vm3, %v347_v3, %v363_v15  ;;  %v368_v20 = vsel %vm356_vm3, %v350_v5, %v367_v16  ;;  %v361_v23 = vsel %vm355_vm5, %v358_v8, %v360_v12  ;;  %v549_v27 = vshrl.u32 %v712_v52, %v543_v4 }
 0x127   :  { %v365_v25 = vsel %vm355_vm5, %v362_v10, %v364_v19  ;;  %v369_v26 = vsel %vm355_vm5, %v366_v11, %v368_v20  ;;  %v547_v32 = vor.u32 %v546_v22, %v545_v7  ;;  %v551_v34 = vshll.u32 %v712_v52, %v542_v48 }
 0x128   :  { %v796_v28 = vmul.u32.u64.low %v766_v42, %v369_v26  ;;  %v797_v29 = vmul.u32.u64.high %v766_v42, %v369_v26, %v796_v28  ;;  %v800_v30 = vmul.u32.u64.low %v766_v42, %v365_v25  ;;  %v801_v31 = vmul.u32.u64.high %v766_v42, %v365_v25, %v800_v30 }
 0x129   :  { %v550_v33 = vor.u32 %v549_v27, %v548_v17  ;;  %v552_v35 = vshrl.u32 %v713_v54, %v543_v4  ;;  %v554_v36 = vshll.u32 %v713_v54, %v542_v48  ;;  %v555_v37 = vshrl.u32 %v714_v56, %v543_v4 }
 0x12a   :  { %v557_v38 = vshll.u32 %v714_v56, %v542_v48  ;;  %v558_v39 = vshrl.u32 %v715_v63, %v543_v4  ;;  %v377_v40 = vmul.u32 %v766_v42, %v361_v23  ;;  %v544_v41 = vshrl.u32 %v710_v46, %v543_v4 }
 0x12b   :  { %v553_v45 = vor.u32 %v552_v35, %v551_v34  ;;  %vm560_vm6 = vcmp.lt.s32.totalorder %v768_v43, 1  ;;  %vm379_vm7 = vc.u32 %v797_v29, %v800_v30  ;;  %v380_v47 = vadd.s32 1, %v801_v31 }
 0x12c   :  { %v556_v51 = vor.u32 %v555_v37, %v554_v36  ;;  %vm561_vm8 = vcmp.lt.s32.totalorder %v768_v43, 2  ;;  %v559_v53 = vor.u32 %v558_v39, %v557_v38  ;;  %vm562_vm9 = vcmp.lt.s32.totalorder %v768_v43, 3 }
 0x12d   :  { %vm563_vm10 = vcmp.lt.s32.totalorder %v768_v43, 4  ;;  %v568_v48 = vsel %vm560_vm6, %v547_v32, %v550_v33  ;;  %v381_v42 = vsel %vm379_vm7, %v380_v47, %v801_v31  ;;  %v572_v58 = vsel %vm560_vm6, %v550_v33, %v553_v45 }
 0x12e   :  { %v565_v55 = vsel %vm563_vm10, %v553_v45, 2102212464  ;;  %v569_v57 = vsel %vm563_vm10, %v556_v51, 920167782  ;;  %v382_v59 = vadd.s32 %v381_v42, %v377_v40  ;;  %v564_v60 = vsel %vm560_vm6, %v544_v41, %v547_v32 }
 0x12f   :  { %v570_v61 = vsel %vm562_vm9, %v553_v45, %v569_v57  ;;  %v573_v62 = vsel %vm563_vm10, %v559_v53, 1326507024  ;;  %v566_v0 = vsel %vm562_vm9, %v550_v33, %v565_v55  ;;  %v425_v9 = vand.u32 2147483647, %v756_v24 }
 0x130   :  { %v571_v1 = vsel %vm561_vm8, %v568_v48, %v570_v61  ;;  %v574_v2 = vsel %vm562_vm9, %v556_v51, %v573_v62  ;;  %v383_v3 = vadd.s32 536870912, %v382_v59  ;;  %v437_v10 = vsel %vm436_vm11, %v773_v49, 0 }
 0x131   :  { %v575_v4 = vsel %vm561_vm8, %v572_v58, %v574_v2  ;;  %v826_v5 = vmul.u32.u64.low %v770_v44, %v571_v1  ;;  %v827_v6 = vmul.u32.u64.high %v770_v44, %v571_v1, %v826_v5  ;;  %v567_v12 = vsel %vm561_vm8, %v564_v60, %v566_v0 }
 0x132   :  { %v831_v7 = vmul.u32.u64.low %v770_v44, %v575_v4  ;;  %v832_v8 = vmul.u32.u64.high %v770_v44, %v575_v4, %v831_v7  ;;  %v836_v11 = vshrl.u32 %v383_v3, 30  ;;  %v439_v15 = vand.u32 31, %v437_v10 }
 0x133   :  { %v586_v17 = vadd.s32 1, %v827_v6  ;;  %v583_v20 = vmul.u32 %v770_v44, %v567_v12  ;;  %v432_v22 = vand.u32 8388607, %v425_v9  ;;  %v438_v33 = vshrl.u32 %v437_v10, 5 }
 0x134   :  { %v385_v16 = vshll.u32 %v836_v11, 30  ;;  %v440_v19 = vsub.s32 32, %v439_v15  ;;  %vm585_vm12 = vc.u32 %v832_v8, %v826_v5  ;;  %v442_v44 = vshll.u32 %v710_v46, %v439_v15 }
 0x135   :  { %v587_v23 = vsel %vm585_vm12, %v586_v17, %v827_v6  ;;  %v433_v28 = vor.u32 8388608, %v432_v22  ;;  %v445_v36 = vshll.u32 %v711_v50, %v439_v15  ;;  %v451_v37 = vshll.u32 %v713_v54, %v439_v15 }
 0x136   :  { %v386_v49 = vsub.s32 %v382_v59, %v385_v16  ;;  %v588_v25 = vadd.s32 %v587_v23, %v583_v20  ;;  %v443_v26 = vshrl.u32 %v711_v50, %v440_v19  ;;  %v446_v31 = vshrl.u32 %v712_v52, %v440_v19 }
 0x137   :  { %v449_v34 = vshrl.u32 %v713_v54, %v440_v19  ;;  %v452_v38 = vshrl.u32 %v714_v56, %v440_v19  ;;  %v448_v41 = vshll.u32 %v712_v52, %v439_v15  ;;  %v455_v53 = vshrl.u32 %v715_v63, %v440_v19 }
 0x138   :  { %v388_v43 = vsub.s32 0, %v386_v49  ;;  %v589_v27 = vadd.s32 536870912, %v588_v25  ;;  %v444_v40 = vor.u32 %v443_v26, %v442_v44  ;;  %v447_v47 = vor.u32 %v446_v31, %v445_v36 }
 0x139   :  { %v453_v51 = vor.u32 %v452_v38, %v451_v37  ;;  %v378_v48 = vadd.s32 %v800_v30, %v797_v29  ;;  %v450_v55 = vor.u32 %v449_v34, %v448_v41  ;;  %v473_v50 = vshll.u32 %v433_v28, 8 }
 0x13a   :  { %v641_v32 = vmin.u32 %v388_v43, %v386_v49  ;;  %v852_v35 = vshrl.u32 %v589_v27, 30  ;;  %v441_v54 = vshrl.u32 %v710_v46, %v440_v19  ;;  %v454_v58 = vshll.u32 %v714_v56, %v439_v15 }
 0x13b   :  { %vm460_vm13 = vcmp.lt.s32.totalorder %v438_v33, 4  ;;  %vm457_vm15 = vcmp.lt.s32.totalorder %v438_v33, 1  ;;  %vm459_vm0 = vcmp.lt.s32.totalorder %v438_v33, 3  ;;  %vm458_vm1 = vcmp.lt.s32.totalorder %v438_v33, 2 }
 0x13c   :  { %v390_v39 = vclz %v641_v32  ;;  %v591_v45 = vshll.u32 %v852_v35, 30  ;;  %v466_v52 = vsel %vm460_vm13, %v453_v51, 920167782  ;;  %v456_v63 = vor.u32 %v455_v53, %v454_v58 }
 0x13d   :  { %v465_v61 = vsel %vm457_vm15, %v444_v40, %v447_v47  ;;  %v467_v62 = vsel %vm459_vm0, %v450_v55, %v466_v52  ;;  %v461_v56 = vsel %vm457_vm15, %v441_v54, %v444_v40  ;;  %v462_v1 = vsel %vm460_vm13, %v450_v55, 2102212464 }
 0x13e   :  { %v642_v42 = vadd.s32 4294967294, %v390_v39  ;;  %v592_v57 = vsub.s32 %v588_v25, %v591_v45  ;;  %v468_v4 = vsel %vm458_vm1, %v465_v61, %v467_v62  ;;  %v469_v6 = vsel %vm457_vm15, %v447_v47, %v450_v55 }
 0x13f   :  { %v470_v10 = vsel %vm460_vm13, %v456_v63, 1326507024  ;;  %v872_v12 = vmul.u32.u64.low %v473_v50, %v468_v4  ;;  %v873_v15 = vmul.u32.u64.high %v473_v50, %v468_v4, %v872_v12  ;;  %v463_v19 = vsel %vm459_vm0, %v447_v47, %v462_v1 }
 0x140   :  { %vm643_vm14 = vcmp.lt.s32.totalorder %v642_v42, 0  ;;  %v594_v60 = vsub.s32 0, %v592_v57  ;;  %v471_v20 = vsel %vm459_vm0, %v453_v51, %v470_v10  ;;  %v464_v26 = vsel %vm458_vm1, %v461_v56, %v463_v19 }
 0x141   :  { %v393_v59 = vsel %vm643_vm14, 0, %v642_v42  ;;  %v483_v27 = vadd.s32 1, %v873_v15  ;;  %v584_v44 = vadd.s32 %v826_v5, %v832_v8  ;;  %v480_v38 = vmul.u32 %v473_v50, %v464_v26 }
 0x142   :  { %v394_v29 = vsub.s32 32, %v393_v59  ;;  %v398_v30 = vsub.s32 4294967266, %v393_v59  ;;  %v395_v0 = vshll.u32 %v386_v49, %v393_v59  ;;  %v649_v46 = vmin.u32 %v594_v60, %v592_v57 }
 0x143   :  { %v472_v49 = vsel %vm458_vm1, %v469_v6, %v471_v20  ;;  %vm324_vm4 = vcmp.lt.s32.totalorder %v748_v13, 0  ;;  %vm892_vm5 = vcmp.le.f32.partialorder %v322_v18, 0.7853982  ;;  %vm530_vm6 = vcmp.lt.s32.totalorder %v750_v14, 0 }
 0x144   :  { %v396_v2 = vshrl.u32 %v378_v48, %v394_v29  ;;  %v399_v3 = vadd.s32 127, %v398_v30  ;;  %v596_v7 = vclz %v649_v46  ;;  %vm911_vm7 = vcmp.le.f32.partialorder %v528_v21, 0.7853982 }
 0x145   :  { %v879_v25 = vmul.u32.u64.low %v473_v50, %v472_v49  ;;  %v880_v43 = vmul.u32.u64.high %v473_v50, %v472_v49, %v879_v25  ;;  %v614_v46 = vsub.s32 4, %v852_v35  ;;  %vm414_vm11 = vweird.f32 %v748_v13 }
 0x146   :  { %v397_v16 = vor.u32 %v396_v2, %v395_v0  ;;  %v400_v17 = vshll.u32 %v399_v3, 23  ;;  %v650_v22 = vadd.s32 4294967294, %v596_v7  ;;  %vm620_vm0 = vweird.f32 %v750_v14 }
 0x147   :  { %vm482_vm3 = vc.u32 %v880_v43, %v872_v12  ;;  %v615_v6 = vsel %vm530_vm6, %v614_v46, %v852_v35  ;;  %vm427_vm1 = vcmp.lt.s32.totalorder %v756_v24, 0 }
 0x148   :  { %v401_v23 = vor.u32 4788187, %v400_v17  ;;  %vm651_vm2 = vcmp.lt.s32.totalorder %v650_v22, 0  ;;  %v404_v31 = vcvt.s32.f32 %v397_v16  ;;  %v484_v33 = vsel %vm482_vm3, %v483_v27, %v873_v15 }
 0x149   :  { %v599_v32 = vsel %vm651_vm2, 0, %v650_v22  ;;  %v485_v47 = vadd.s32 %v484_v33, %v480_v38  ;;  %v481_v16 = vadd.s32 %v872_v12, %v880_v43  ;;  %v617_v22 = vsel %vm911_vm7, 0, %v615_v6 }
 0x14a   :  { %v402_v28 = vand.u32 2147483647, %v401_v23  ;;  %v600_v34 = vsub.s32 32, %v599_v32  ;;  %v604_v36 = vsub.s32 4294967266, %v599_v32  ;;  %v601_v39 = vshll.u32 %v592_v57, %v599_v32 }
 0x14b   :  { %v486_v48 = vadd.s32 536870912, %v485_v47  ;;  %v408_v57 = vsub.s32 4, %v836_v11  ;;  %v621_v27 = vand.u32 3, %v617_v22  ;;  %vm426_vm2 = vcmp.le.f32.partialorder %v425_v9, 0.7853982 }
 0x14c   :  { %v405_v37 = vmul.f32 %v404_v31, %v402_v28  ;;  %v602_v40 = vshrl.u32 %v584_v44, %v600_v34  ;;  %v605_v41 = vadd.s32 127, %v604_v36 }
 0x14d   :  { %v901_v50 = vshrl.u32 %v486_v48, 30  ;;  %v409_v60 = vsel %vm324_vm4, %v408_v57, %v836_v11  ;;  %vm626_vm13 = vcmp.eq.s32.totalorder %v621_v27, 2  ;;  %vm623_vm14 = vcmp.eq.s32.totalorder %v621_v27, 0 }
 0x14e   :  { %v406_v45 = vxor.u32 2147483648, %v405_v37  ;;  %v603_v51 = vor.u32 %v602_v40, %v601_v39  ;;  %v606_v53 = vshll.u32 %v605_v41, 23  ;;  %v411_v62 = vsel %vm892_vm5, 0, %v409_v60 }
 0x14f   :  { %v488_v58 = vshll.u32 %v901_v50, 30  ;;  %v415_v21 = vand.u32 3, %v411_v62  ;;  %vm622_vm15 = vcmp.lt.s32.totalorder %v621_v27, 2 }
 0x150   :  { %v407_v8 = vsel %vm324_vm4, %v406_v45, %v405_v37  ;;  %v607_v55 = vor.u32 4788187, %v606_v53  ;;  %v610_v18 = vcvt.s32.f32 %v603_v51  ;;  %v511_v51 = vsub.s32 4, %v901_v50 }
 0x151   :  { %v410_v42 = vsel %vm892_vm5, %v748_v13, %v407_v8  ;;  %v489_v59 = vsub.s32 %v485_v47, %v488_v58  ;;  %vm417_vm9 = vcmp.eq.s32.totalorder %v415_v21, 0  ;;  %vm420_vm10 = vcmp.eq.s32.totalorder %v415_v21, 2 }
 0x152   :  { %673 = vcosq.f32 %v410_v42  ;;  %v608_v54 = vand.u32 2147483647, %v607_v55  ;;  %vm416_vm12 = vcmp.lt.s32.totalorder %v415_v21, 2 }
 0x153   :  { %675 = vsinq.f32 %v410_v42  ;;  %v491_v61 = vsub.s32 0, %v489_v59 }
 0x154   :  { %v611_v52 = vmul.f32 %v610_v18, %v608_v54 }
 0x155   :  { %v645_v0 = vmin.u32 %v491_v61, %v489_v59 }
 0x156   :  { %v612_v63 = vxor.u32 2147483648, %v611_v52 }
 0x157   :  { %v493_v56 = vclz %v645_v0 }
 0x158   :  { %v613_v30 = vsel %vm530_vm6, %v612_v63, %v611_v52  ;;  %vm517_vm6 = vweird.f32 %v756_v24 }
 0x159   :  { %v616_v11 = vsel %vm911_vm7, %v750_v14, %v613_v30  ;;  %v646_v1 = vadd.s32 4294967294, %v493_v56  ;;  %v512_v14 = vsel %vm427_vm1, %v511_v51, %v901_v50 }
 0x15a   :  { %677 = vcosq.f32 %v616_v11  ;;  %v514_v53 = vsel %vm426_vm2, 0, %v512_v14 }
 0x15b   :  { %679 = vsinq.f32 %v616_v11  ;;  %vm647_vm8 = vcmp.lt.s32.totalorder %v646_v1, 0  ;;  %v518_v5 = vand.u32 3, %v514_v53 }
 0x15c   :  { %v496_v10 = vsel %vm647_vm8, 0, %v646_v1 }
 0x15d   :  { %v497_v17 = vsub.s32 32, %v496_v10  ;;  %v501_v19 = vsub.s32 4294967266, %v496_v10  ;;  %v498_v35 = vshll.u32 %v489_v59, %v496_v10  ;;  %vm523_vm3 = vcmp.eq.s32.totalorder %v518_v5, 2 }
 0x15e   :  { %vm520_vm4 = vcmp.eq.s32.totalorder %v518_v5, 0  ;;  %vm519_vm5 = vcmp.lt.s32.totalorder %v518_v5, 2 }
 0x15f   :  { %v674_v2 = vpop.eup %673  ;;  %v499_v23 = vshrl.u32 %v481_v16, %v497_v17  ;;  %v502_v25 = vadd.s32 127, %v501_v19 }
 0x160   :  { %v676_v3 = vpop.eup %675  ;;  %v421_v4 = vxor.u32 2147483648, %v674_v2 }
 0x161   :  { %v418_v7 = vxor.u32 2147483648, %v676_v3  ;;  %v500_v12 = vor.u32 %v499_v23, %v498_v35  ;;  %v503_v43 = vshll.u32 %v502_v25, 23 }
 0x162   :  { %v422_v15 = vsel %vm420_vm10, %v421_v4, %v676_v3 }
 0x163   :  { %v419_v20 = vsel %vm417_vm9, %v674_v2, %v418_v7  ;;  %v504_v31 = vor.u32 4788187, %v503_v43  ;;  %v507_v36 = vcvt.s32.f32 %v500_v12 }
 0x164   :  { %v423_v49 = vsel %vm416_vm12, %v419_v20, %v422_v15 }
 0x165   :  { %v424_v26 = vsel %vm414_vm11, nan, %v423_v49  ;;  %v505_v34 = vand.u32 2147483647, %v504_v31 }
 0x166   :  { %631 = vst [vmem:[%s951_s3] sm:$0xff] %v424_v26 }
 0x167   :  { %v678_v28 = vpop.eup %677  ;;  %v508_v39 = vmul.f32 %v507_v36, %v505_v34 }
 0x168   :  { %v680_v13 = vpop.eup %679  ;;  %v627_v32 = vxor.u32 2147483648, %v678_v28 }
 0x169   :  { %v624_v44 = vxor.u32 2147483648, %v680_v13  ;;  %v509_v33 = vxor.u32 2147483648, %v508_v39 }
 0x16a   :  { %v628_v37 = vsel %vm626_vm13, %v627_v32, %v680_v13 }
 0x16b   :  { %v625_v38 = vsel %vm623_vm14, %v678_v28, %v624_v44  ;;  %v510_v45 = vsel %vm427_vm1, %v509_v33, %v508_v39 }
 0x16c   :  { %v629_v40 = vsel %vm622_vm15, %v625_v38, %v628_v37  ;;  %v513_v47 = vsel %vm426_vm2, %v756_v24, %v510_v45 }
 0x16d   :  { %v630_v41 = vsel %vm620_vm0, nan, %v629_v40  ;;  %681 = vcosq.f32 %v513_v47 }
 0x16e   :  { %633 = vst [vmem:[%s951_s3 + $0x10] sm:$0xff] %v630_v41  ;;  %683 = vsinq.f32 %v513_v47 }
 0x17a   :  { %v682_v8 = vpop.eup %681 }
 0x17b   :  { %v684_v48 = vpop.eup %683  ;;  %v524_v42 = vxor.u32 2147483648, %v682_v8 }
 0x17c   :  { %v521_v55 = vxor.u32 2147483648, %v684_v48 }
 0x17d   :  { %v525_v57 = vsel %vm523_vm3, %v524_v42, %v684_v48 }
 0x17e   :  { %v522_v9 = vsel %vm520_vm4, %v682_v8, %v521_v55 }
 0x17f   :  { %v526_v54 = vsel %vm519_vm5, %v522_v9, %v525_v57 }
 0x180   :  { %v527_v18 = vsel %vm517_vm6, nan, %v526_v54 }
 0x181   :  { %632 = vst [vmem:[%s951_s3 + $0x8] sm:$0xff] %v527_v18 }
 0x182   :  { %639 = vsyncpa [#allocation3], 1 }

</bundles_post_ra>
